<compile_context>
chip_gen: v7x
topology: tpu7x:2x2x1
jax: 0.10.0
libtpu: 0.0.40
codegen_flags: <defaults>
</compile_context>

<pallas_src>
import functools

import jax
import jax.numpy as jnp
from jax import lax
from jax.experimental import pallas as pl
from jax.experimental.pallas import tpu as pltpu

HIDDEN = 256
BN_EPS = 1e-5
LANE = 128
BATCH_ALIGN = 16  # native bf16 tile is (16,128); also satisfies the (8,128) rule


def _round_up(n, m):
    return (n + m - 1) // m * m


def _vmem_capacity_bytes():
    try:
        return int(pltpu.get_tpu_info().vmem_capacity_bytes)
    except Exception:
        return 64 * 1024 * 1024  # v7x per-TC physical VMEM: safe lower bound


def _pick_tile(batch, bytes_per_row, resident_bytes, cap, budget):
    """Largest 16-aligned batch tile whose double-buffered streams fit `budget`."""
    avail = max(budget - resident_bytes, 2 * BATCH_ALIGN * bytes_per_row)
    tb = avail // (2 * bytes_per_row)           # 2x: default double buffering
    tb = min(int(tb), int(cap), _round_up(batch, BATCH_ALIGN))
    return max(BATCH_ALIGN, (tb // BATCH_ALIGN) * BATCH_ALIGN)


# ------------------------------------------------------------------ pass 1 --
def _linear_bn_stats_kernel(x_ref, w1_ref, b1_ref, h_ref, stats_ref,
                            *, batch, block_b):
    """h = x @ W1 + b1 ; per-tile partial [sum(h); sum(h*h)] over real rows."""
    i = pl.program_id(0)

    h = jnp.dot(x_ref[...], w1_ref[...], preferred_element_type=jnp.float32)
    h = h + b1_ref[...]
    h_ref[...] = h.astype(h_ref.dtype)          # bf16 store (lane-dense)

    # Row-validity mask (last tile may hold zero-padded batch rows).  The
    # batch(sublane)-axis reduction is ONE (1,tb)@(tb,512) MXU matmul over
    # concat([h, h*h]) instead of a cross-sublane XLU reduce / two matmuls.
    rows = i * block_b + lax.broadcasted_iota(jnp.int32, (1, block_b), 1)
    ones = (rows < batch).astype(jnp.float32)
    hh = jnp.concatenate([h, h * h], axis=1)                        # (tb, 512)
    s = jnp.dot(ones, hh, preferred_element_type=jnp.float32)       # (1, 512)
    stats_ref[0, :, :] = jnp.concatenate([s[:, :HIDDEN], s[:, HIDDEN:]], axis=0)


# ------------------------------------------------------------------ pass 2 --
def _bn_relu_linear_kernel(h_ref, scale_ref, shift_ref, w2_ref, b2_ref, o_ref):
    """y = relu(h * scale + shift) @ W2 + b2 (BN already folded in the wrapper)."""
    h = h_ref[...].astype(jnp.float32) * scale_ref[...] + shift_ref[...]
    h = jnp.maximum(h, 0.0)
    y = jnp.dot(h.astype(w2_ref.dtype), w2_ref[...],
                preferred_element_type=jnp.float32)
    o_ref[...] = (y + b2_ref[...]).astype(o_ref.dtype)


# ----------------------------------------------------------------- wrapper --
def mlp_head(x, w1, b1, gamma, beta, w2, b2, *,
             block_b=None, block_b2=None, h_dtype=jnp.bfloat16):
    """x: (B, in_dim). Weights stored pre-transposed vs PyTorch:
    w1: (in_dim, 256), w2: (256, out_dim). x/w1/w2 may be f32 or bf16."""
    B, K = x.shape
    assert w1.shape == (K, HIDDEN)
    out_dim = w2.shape[1]
    f32 = jnp.float32

    # Lane-dense padding targets for contraction / output feature dims.
    Kp = _round_up(K, LANE)
    Np = _round_up(out_dim, LANE)

    x_bytes = jnp.dtype(x.dtype).itemsize
    w1_bytes = jnp.dtype(w1.dtype).itemsize
    w2_bytes = jnp.dtype(w2.dtype).itemsize
    h_bytes = jnp.dtype(h_dtype).itemsize
    o_bytes = x_bytes

    vmem_cap = _vmem_capacity_bytes()
    budget = vmem_cap // 2                       # headroom for residents/scratch

    # Pass-1 tile: streams x (Kp) + h; W1/b1 resident (count 2x, conservative).
    res1 = 2 * (Kp * HIDDEN * w1_bytes + HIDDEN * 4) + 2 * 2 * HIDDEN * 4
    row1 = Kp * x_bytes + HIDDEN * h_bytes
    tb1 = _pick_tile(B, row1, res1, 1024 if block_b is None else block_b, budget)

    # Pass-2 tile: only ~(256+Np) bytes/row -> use a much larger tile.
    res2 = 2 * (HIDDEN * Np * w2_bytes + Np * 4 + 2 * HIDDEN * 4)
    row2 = HIDDEN * h_bytes + Np * o_bytes
    tb2 = _pick_tile(B, row2, res2, 4096 if block_b2 is None else block_b2, budget)
    tb2 = max(tb1, (tb2 // tb1) * tb1)           # keep pass-2 tile a multiple
    Bp = _round_up(B, tb2)                       # multiple of tb2, hence of tb1
    n1, n2 = Bp // tb1, Bp // tb2

    def maybe_pad(a, rows, cols):                # skip no-op pads (no HBM copy)
        pr, pc = rows - a.shape[0], cols - a.shape[1]
        return a if pr == 0 and pc == 0 else jnp.pad(a, ((0, pr), (0, pc)))

    x_p = maybe_pad(x, Bp, Kp)
    w1_p = maybe_pad(w1, Kp, HIDDEN)
    w2_p = maybe_pad(w2, HIDDEN, Np)
    b1_p = jnp.asarray(b1, f32).reshape(1, HIDDEN)
    b2_p = maybe_pad(jnp.asarray(b2, f32).reshape(1, out_dim), 1, Np)

    resident = lambda shape: pl.BlockSpec(shape, lambda i: (0,) * len(shape))
    streamed = lambda shape: pl.BlockSpec(
        shape, lambda i: (i,) + (0,) * (len(shape) - 1))

    # ---- pass 1: Linear1 + per-tile partial BN statistics ("parallel") ------
    ws1 = res1 + 2 * tb1 * row1 + 2 * n1 * 2 * HIDDEN * 4 + (4 << 20)
    h, partials = pl.pallas_call(
        functools.partial(_linear_bn_stats_kernel, batch=B, block_b=tb1),
        grid=(n1,),
        in_specs=[streamed((tb1, Kp)),            # x  (streamed)
                  resident((Kp, HIDDEN)),         # W1 (VMEM-resident)
                  resident((1, HIDDEN))],         # b1
        out_specs=[streamed((tb1, HIDDEN)),       # h  (bf16 by default)
                   streamed((1, 2, HIDDEN))],     # per-tile [sum; sum_sq]
        out_shape=(jax.ShapeDtypeStruct((Bp, HIDDEN), h_dtype),
                   jax.ShapeDtypeStruct((n1, 2, HIDDEN), jnp.float32)),
        compiler_params=pltpu.CompilerParams(
            dimension_semantics=("parallel",),    # megacore split on v7x
            vmem_limit_bytes=int(min(vmem_cap, max(ws1, 16 * 1024 * 1024)))),
    )(x_p, w1_p, b1_p)

    # ---- BN fold hoisted to the wrapper (tiny, done once) -------------------
    stats = jnp.sum(partials, axis=0)                 # exact whole-batch stats
    mean = stats[0] / B
    var = jnp.maximum(stats[1] / B - mean * mean, 0.0)   # biased var (training)
    scale = jnp.asarray(gamma, f32).reshape(HIDDEN) * lax.rsqrt(var + BN_EPS)
    shift = jnp.asarray(beta, f32).reshape(HIDDEN) - mean * scale
    scale = scale.reshape(1, HIDDEN)
    shift = shift.reshape(1, HIDDEN)

    # ---- pass 2: fused scale/shift + ReLU + Linear2 ("parallel") ------------
    ws2 = res2 + 2 * tb2 * row2 + (4 << 20)
    out_p = pl.pallas_call(
        _bn_relu_linear_kernel,
        grid=(n2,),
        in_specs=[streamed((tb2, HIDDEN)),        # h
                  resident((1, HIDDEN)),          # scale
                  resident((1, HIDDEN)),          # shift
                  resident((HIDDEN, Np)),         # W2
                  resident((1, Np))],             # b2
        out_specs=streamed((tb2, Np)),
        out_shape=jax.ShapeDtypeStruct((Bp, Np), x.dtype),
        compiler_params=pltpu.CompilerParams(
            dimension_semantics=("parallel",),
            vmem_limit_bytes=int(min(vmem_cap, max(ws2, 16 * 1024 * 1024)))),
    )(h, scale, shift, w2_p, b2_p)

    if Bp == B and Np == out_dim:
        return out_p
    return out_p[:B, :out_dim]


# ------------------------------------------------------------------- utils --
def init_params(key, in_dim, out_dim):
    """PyTorch-Linear-style U[-1/sqrt(fan_in), +] init; BN gamma=1, beta=0."""
    k1, k2, k3, k4 = jax.random.split(key, 4)
    lim1 = 1.0 / jnp.sqrt(in_dim)
    lim2 = 1.0 / jnp.sqrt(HIDDEN)
    w1 = jax.random.uniform(k1, (in_dim, HIDDEN), jnp.float32, -lim1, lim1)
    b1 = jax.random.uniform(k2, (1, HIDDEN), jnp.float32, -lim1, lim1)
    w2 = jax.random.uniform(k3, (HIDDEN, out_dim), jnp.float32, -lim2, lim2)
    b2 = jax.random.uniform(k4, (1, out_dim), jnp.float32, -lim2, lim2)
    gamma = jnp.ones((1, HIDDEN), jnp.float32)
    beta = jnp.zeros((1, HIDDEN), jnp.float32)
    return w1, b1, gamma, beta, w2, b2


def reference(x, w1, b1, gamma, beta, w2, b2):
    h = x @ w1 + b1
    mean = h.mean(0, keepdims=True)
    var = ((h - mean) ** 2).mean(0, keepdims=True)
    h = (h - mean) / jnp.sqrt(var + BN_EPS) * gamma + beta
    h = jnp.maximum(h, 0.0)
    return h @ w2 + b2


if __name__ == "__main__":
    B, in_dim, out_dim = 64, 128, 64
    key = jax.random.PRNGKey(0)
    kx, kp = jax.random.split(key)
    x = jax.random.normal(kx, (B, in_dim), jnp.float32)
    params = init_params(kp, in_dim, out_dim)
    ref = reference(x, *params)

    # Exactness check: f32 h intermediate, 4 pass-1 tiles / 2 pass-2 tiles so
    # cross-tile partial BN statistics + decoupled tiling are exercised.
    out = mlp_head(x, *params, block_b=16, block_b2=32, h_dtype=jnp.float32)
    out = jax.block_until_ready(out)
    assert out.shape == (B, out_dim)
    assert jnp.allclose(out, ref, atol=2e-3, rtol=2e-3), "f32-h mismatch vs reference"

    # Default (performance) path: bf16 h intermediate, auto-derived tiles.
    out_h16 = jax.block_until_ready(mlp_head(x, *params))
    assert out_h16.shape == (B, out_dim)
    assert jnp.allclose(out_h16, ref, atol=5e-2, rtol=5e-2), \
        "bf16-h mismatch vs reference"

    # bf16 storage path for x / W1 / W2 (halves HBM traffic); BN math stays f32.
    out_bf = mlp_head(x.astype(jnp.bfloat16),
                      params[0].astype(jnp.bfloat16), params[1], params[2],
                      params[3], params[4].astype(jnp.bfloat16), params[5],
                      block_b=16, block_b2=32)
    out_bf = jax.block_until_ready(out_bf).astype(jnp.float32)
    assert out_bf.shape == (B, out_dim)
    assert bool(jnp.all(jnp.isfinite(out_bf)))
    assert jnp.allclose(out_bf, ref, atol=1.5e-1, rtol=1.5e-1), \
        "bf16 mismatch vs reference"

    print("KERNEL_OK")
</pallas_src>

<mosaic_0001>
module attributes {stable_mosaic.version = 11 : i64} {
  func.func @_linear_bn_stats_kernel(%arg0: i32, %arg1: memref<16x128xf32, #tpu.memory_space<vmem>>, %arg2: memref<128x256xf32, #tpu.memory_space<vmem>>, %arg3: memref<1x256xf32, #tpu.memory_space<vmem>>, %arg4: memref<16x256xf32, #tpu.memory_space<vmem>>, %arg5: memref<1x2x256xf32, #tpu.memory_space<vmem>>) attributes {dimension_semantics = [#tpu.dimension_semantics<parallel>], iteration_bounds = array<i64: 4>, scalar_prefetch = 0 : i64, scratch_operands = 0 : i64, tpu.core_type = #tpu.core_type<tc>, window_params = [{transform_indices = @transform_0, window_bounds = array<i64: 16, 128>}, {pipeline_mode = #tpu.pipeline_mode<synchronous>, transform_indices = @transform_1, window_bounds = array<i64: 128, 256>}, {pipeline_mode = #tpu.pipeline_mode<synchronous>, transform_indices = @transform_2, window_bounds = array<i64: 1, 256>}, {transform_indices = @transform_3, window_bounds = array<i64: 16, 256>}, {transform_indices = @transform_4, window_bounds = array<i64: 1, 2, 256>}]} {
    %c0 = arith.constant 0 : index
    %c0_0 = arith.constant 0 : index
    %0 = vector.load %arg1[%c0, %c0_0] : memref<16x128xf32, #tpu.memory_space<vmem>>, vector<16x128xf32>
    %c0_1 = arith.constant 0 : index
    %c0_2 = arith.constant 0 : index
    %1 = vector.load %arg2[%c0_1, %c0_2] : memref<128x256xf32, #tpu.memory_space<vmem>>, vector<128x256xf32>
    %cst = arith.constant dense<0.000000e+00> : vector<16x256xf32>
    %2 = tpu.matmul %0, %1, %cst {dimension_numbers = #tpu.dot_dimension_numbers<[1], [0], [0], [1], [0, 0, 1, 1], [], []>} : vector<16x128xf32>, vector<128x256xf32>, vector<16x256xf32> -> vector<16x256xf32>
    %c0_3 = arith.constant 0 : index
    %c0_4 = arith.constant 0 : index
    %3 = vector.load %arg3[%c0_3, %c0_4] : memref<1x256xf32, #tpu.memory_space<vmem>>, vector<1x256xf32>
    %4 = vector.broadcast %3 : vector<1x256xf32> to vector<16x256xf32>
    %5 = arith.addf %2, %4 : vector<16x256xf32>
    %c0_5 = arith.constant 0 : index
    %c0_6 = arith.constant 0 : index
    %6 = vector.load %arg4[%c0_5, %c0_6] : memref<16x256xf32, #tpu.memory_space<vmem>>, vector<16x256xf32>
    tpu.vector_store %arg4[%c0_5, %c0_6], %5 {strides = array<i32>} : memref<16x256xf32, #tpu.memory_space<vmem>>, vector<16x256xf32>,
    %c16_i32 = arith.constant 16 : i32
    %7 = arith.muli %arg0, %c16_i32 : i32
    %8 = tpu.iota {dimensions = array<i32: 1>} : vector<1x16xi32>
    %9 = vector.broadcast %7 : i32 to vector<1x16xi32>
    %10 = arith.addi %9, %8 : vector<1x16xi32>
    %c64_i32 = arith.constant 64 : i32
    %11 = vector.broadcast %c64_i32 : i32 to vector<1x16xi32>
    %12 = arith.cmpi slt, %10, %11 : vector<1x16xi32>
    %13 = arith.extui %12 : vector<1x16xi1> to vector<1x16xi32>
    %14 = arith.sitofp %13 : vector<1x16xi32> to vector<1x16xf32>
    %15 = arith.mulf %5, %5 : vector<16x256xf32>
    %16 = tpu.concatenate %5, %15 in 1 : vector<16x256xf32>, vector<16x256xf32> -> vector<16x512xf32>
    %cst_7 = arith.constant dense<0.000000e+00> : vector<1x512xf32>
    %17 = tpu.matmul %14, %16, %cst_7 {dimension_numbers = #tpu.dot_dimension_numbers<[1], [0], [0], [1], [0, 0, 1, 1], [], []>} : vector<1x16xf32>, vector<16x512xf32>, vector<1x512xf32> -> vector<1x512xf32>
    %18 = vector.extract_strided_slice %17 {offsets = [0, 0], sizes = [1, 256], strides = [1, 1]} : vector<1x512xf32> to vector<1x256xf32>
    %19 = vector.extract_strided_slice %17 {offsets = [0, 256], sizes = [1, 256], strides = [1, 1]} : vector<1x512xf32> to vector<1x256xf32>
    %20 = tpu.concatenate %18, %19 in 0 : vector<1x256xf32>, vector<1x256xf32> -> vector<2x256xf32>
    %c0_8 = arith.constant 0 : index
    %c0_9 = arith.constant 0 : index
    %c0_10 = arith.constant 0 : index
    %21 = vector.load %arg5[%c0_8, %c0_9, %c0_10] : memref<1x2x256xf32, #tpu.memory_space<vmem>>, vector<1x2x256xf32>
    %22 = vector.shape_cast %21 : vector<1x2x256xf32> to vector<2x256xf32>
    %23 = vector.shape_cast %20 : vector<2x256xf32> to vector<1x2x256xf32>
    tpu.vector_store %arg5[%c0_8, %c0_9, %c0_10], %23 {strides = array<i32>} : memref<1x2x256xf32, #tpu.memory_space<vmem>>, vector<1x2x256xf32>,
    return
  }
  func.func @transform_0(%arg0: i32) -> (i32, i32) {
    %c0_i32 = arith.constant 0 : i32
    %c0_i32_0 = arith.constant 0 : i32
    return %arg0, %c0_i32 : i32, i32
  }
  func.func @transform_1(%arg0: i32) -> (i32, i32) {
    %c0_i32 = arith.constant 0 : i32
    %c0_i32_0 = arith.constant 0 : i32
    %c0_i32_1 = arith.constant 0 : i32
    return %c0_i32, %c0_i32_0 : i32, i32
  }
  func.func @transform_2(%arg0: i32) -> (i32, i32) {
    %c0_i32 = arith.constant 0 : i32
    %c0_i32_0 = arith.constant 0 : i32
    %c0_i32_1 = arith.constant 0 : i32
    return %c0_i32, %c0_i32_0 : i32, i32
  }
  func.func @transform_3(%arg0: i32) -> (i32, i32) {
    %c0_i32 = arith.constant 0 : i32
    %c0_i32_0 = arith.constant 0 : i32
    return %arg0, %c0_i32 : i32, i32
  }
  func.func @transform_4(%arg0: i32) -> (i32, i32, i32) {
    %c0_i32 = arith.constant 0 : i32
    %c0_i32_0 = arith.constant 0 : i32
    %c0_i32_1 = arith.constant 0 : i32
    return %arg0, %c0_i32, %c0_i32_0 : i32, i32, i32
  }
}

</mosaic_0001>

<bundles_post_ra>
// kernel: tpu_custom_call.1
= control target key start
LH: loop header
LB: loop body
LE: loop exit
PB: predicated region body
PF: predicated region fallthrough
CT: control target
= control target key end

     0   :  { %10 = vsyncpa [#allocation3], 0  ;;  %s1280_s0 = inlined_call_operand.hbm [shape: f32[64,128], index: 0, kind: input, shape index: {}]   ;;  %s1281_s1 = inlined_call_operand.hbm [shape: f32[128,256], index: 1, kind: input, shape index: {}]   ;;  %s1282_s2 = inlined_call_operand.vmem [shape: f32[1,256], index: 2, kind: input, shape index: {}]   ;;  %s1283_s3 = inlined_call_operand.hbm [shape: f32[64,256], index: 3, kind: output, shape index: {0}]   ;;  %s1284_s4 = inlined_call_operand.hbm [shape: f32[4,2,256], index: 4, kind: output, shape index: {1}]  }
   0x1   :  { %12 = vsyncpa [#allocation3 + $0x1], 0 }
   0x2   :  { %13 = vsyncpa [#allocation6], 0 }
   0x3   :  { %14 = vsyncpa [#allocation4], 0 }
   0x4   :  { %16 = vsyncpa [#allocation4 + $0x1], 0 }
   0x5   :  { %17 = vsyncpa [#allocation9], 0 }
   0x6   :  { %19 = vsyncpa [#allocation9 + $0x1], 0  ;;  %s1036_s15 = smov 0   ;;  %s1038_s16 = smov 0  }
   0x7   :  { %s1040_s17 = smov 0   ;;  %s1042_s18 = smov 0  }
   0x8 LB: > { %s1057_s19 = sadd.s32 4294967295, %s998_s18   ;;  %s699_s20 = sadd.s32 4294967294, %s998_s18   ;;  %s998_s18 = sphi %s1042_s18, %s1303_s18   ;;  %s994_s17 = sphi %s1040_s17, %s1302_s17   ;;  %s990_s16 = sphi %s1038_s16, %s1301_s16   ;;  %s986_s15 = sphi %s1036_s15, %s1300_s15  }
   0x9   : > { %p45_p0 = scmp.ne.s32.totalorder %s990_s16, %s986_s15  ;;  %p1285_p1 = scmp.eq.s32.totalorder %s1057_s19, 0 }
   0xa   : > { %p117_p3 = scmp.eq.s32.totalorder %s699_s20, 3  ;;  %p700_p5 = scmp.ge.s32.totalorder %s998_s18, 1 }
   0xb   : > { %p1066_p4 = por %p1285_p1, %p45_p0  ;;  %p150_p7 = scmp.lt.s32.totalorder %s998_s18, 5 }
   0xc   : > { %p1071_p6 = por %p117_p3, %p45_p0  ;;  %s1000_s24 = smov [#allocation5]  }
   0xd   : > { %s1288_s21 = scalar_select %p1066_p4, 1, 0 }
   0xe   : > { %s1289_s22 = scalar_select %p1071_p6, 1, 0 }
   0xf   : > { %p1076_p8 = pnand %p700_p5, %p150_p7  ;;  %s162_s25 = sshll.u32 %s1000_s24, 4  ;;  %s163_s25 = int_to_ptr.vmem [resolvable:$true] %s162_s25 }
  0x10   : > { %s1089_s27 = sadd.s32 1, %s998_s18   ;;  %s32_s28 = sadd.s32 1, %s994_s17 }
  0x11   : > { %s1290_s23 = scalar_select %p1076_p8, 1, 0 }
  0x12   : > { %p779_p9 = pneg %p1076_p8  ;;  %s29_s29 = ssub.s32 %s998_s18, %s1089_s27 }
  0x13   : > { %s838_s6 = scalar_lea.hbm %s1281_s1, 4096 }
  0x14   : > { %p1084_p10 = pnand %p779_p9, %p1285_p1  ;;  %p839_p11 = scmp.ne.s32.totalorder %s1281_s1, %s838_s6 }
  0x15   : > { %p845_p3 = scmp.lt.u32.totalorder %s838_s6, %s1281_s1 }
  0x16   : > { %p840_p12 = pneg %p1084_p10 }
  0x18   : > { %p841_p13 = pnand %p840_p12, %p839_p11 }
  0x1a   : > { %p842_p0 = pneg %p841_p13 }
  0x1c   : > { %p847_p5 = pnand %p845_p3, %p842_p0 }
  0x1e   : > { %850 = shalt.err (!%p847_p5)
}
  0x1f   : > { %s851_s11 = scalar_lea.vmem %s163_s25, 4096  ;;  %p859_p2 = scmp.lt.s32.totalorder %s163_s25, %s163_s25 }
  0x20   : > { %p852_p7 = scmp.ne.s32.totalorder %s163_s25, %s851_s11  ;;  %p860_p6 = scmp.lt.s32.totalorder %s851_s11, %s851_s11 }
  0x22   : > { %p854_p9 = pnand %p852_p7, %p840_p12  ;;  %p861_p4 = por %p860_p6, %p859_p2 }
  0x24   : > { %p855_p1 = pneg %p854_p9 }
  0x26   : > { %p862_p8 = pnand %p861_p4, %p855_p1 }
  0x28   : > { %865 = shalt.err (!%p862_p8)
}
  0x29   : > { %s1001_s12 = smov 256   ;;  %s1002_s13 = smov 16  }
  0x2a   : > { %782 = dma.hbm_to_vmem [thread:$0]  (!%p1084_p10), %s1281_s1, 4096, %s163_s25, [#allocation6], %s1001_s12, %s1001_s12, %s1002_s13  }
  0x2b   : > { %p30_p11 = scmp.eq.s32.totalorder %s29_s29, 0  ;;  %p39_p2 = scmp.ne.s32.totalorder %s994_s17, %s990_s16 }
  0x2c   : > { %p40_p1 = scmp.eq.s32.totalorder %s998_s18, 0  ;;  %p795_p4 = scmp.lt.s32.totalorder %s998_s18, 4 }
  0x2d   : > { %s1115_s24 = scalar_select %p30_p11, %s994_s17, %s32_s28  }
  0x2e   : > { %p41_p6 = por %p40_p1, %p39_p2  ;;  %p1292_p8 = scmp.eq.s32.totalorder %s1057_s19, 3 }
  0x2f   : > { %s179_s5 = sand.u32 1, %s994_s17   ;;  %s725_s6 = sshll.u32 %s998_s18, 8 }
  0x30   : > { %p1119_p12 = por %p1292_p8, %p39_p2  ;;  %s703_s7 = sshll.u32 %s179_s5, 4 }
  0x31   : > { %s1128_s9 = scalar_lea.hbm %s1280_s0, %s725_s6  ;;  %s183_s25 = scalar_lea.vmem [#allocation2], %s703_s7 }
  0x32   : > { %s190_s28 = sshll.u32 %s183_s25, 4  ;;  %p1130_p10 = pnand %p795_p4, %p41_p6  ;;  %s1134_s28 = int_to_ptr.vmem [resolvable:$true] %s190_s28 }
  0x33   : > { %s1136_s10 = scalar_lea.sflag [#allocation3], %s179_s5  ;;  %s866_s11 = scalar_lea.hbm %s1128_s9, 256 }
  0x34   : > { %p867_p13 = scmp.ne.s32.totalorder %s1128_s9, %s866_s11  ;;  %p868_p0 = pneg %p1130_p10 }
  0x35   : > { %s871_s14 = scalar_lea.hbm %s1280_s0, 1024  ;;  %p872_p7 = scmp.lt.u32.totalorder %s1128_s9, %s1280_s0 }
  0x36   : > { %p869_p3 = pnand %p868_p0, %p867_p13  ;;  %p873_p9 = scmp.lt.u32.totalorder %s871_s14, %s866_s11 }
  0x37   : > { %p875_p2 = scmp.lt.u32.totalorder %s866_s11, %s1128_s9 }
  0x38   : > { %p870_p5 = pneg %p869_p3  ;;  %p874_p11 = por %p873_p9, %p872_p7 }
  0x3a   : > { %p876_p1 = por %p875_p2, %p874_p11 }
  0x3c   : > { %p877_p4 = pnand %p876_p1, %p870_p5 }
  0x3e   : > { %880 = shalt.err (!%p877_p4)
}
  0x3f   : > { %s881_s5 = scalar_lea.vmem %s1134_s28, 256  ;;  %s1003_s7 = smov [#allocation2]  }
  0x40   : > { %p882_p6 = scmp.ne.s32.totalorder %s1134_s28, %s881_s5  ;;  %s886_s26 = sshll.u32 %s1003_s7, 4  ;;  %s887_s26 = int_to_ptr.vmem [resolvable:$false] %s886_s26 }
  0x41   : > { %s888_s8 = scalar_lea.vmem %s887_s26, 512  ;;  %p889_p3 = scmp.lt.s32.totalorder %s1134_s28, %s887_s26 }
  0x42   : > { %p884_p8 = pnand %p882_p6, %p868_p0  ;;  %p890_p7 = scmp.lt.s32.totalorder %s888_s8, %s881_s5 }
  0x44   : > { %p885_p13 = pneg %p884_p8  ;;  %p891_p9 = por %p890_p7, %p889_p3 }
  0x46   : > { %p892_p11 = pnand %p891_p9, %p885_p13 }
  0x48   : > { %895 = shalt.err (!%p892_p11)
}
  0x49   : > { %s1004_s25 = smov 128   ;;  %s1005_s11 = smov 8  }
  0x4a   : > { %786 = dma.hbm_to_vmem [thread:$0]  (!%p1130_p10), %s1128_s9, 256, %s1134_s28, %s1136_s10, %s1004_s25, %s1004_s25, %s1005_s11  }
  0x4b   : > { %p1295_p0 = scmp.ne.s32.totalorder %s1290_s23, 0 }
  0x4c   : > { %s1167_s12 = sand.u32 (!%p1295_p0), 1, %s990_s16   ;;  %p1296_p5 = scmp.ne.s32.totalorder (!%p1295_p0), %s1288_s21, 0 }
  0x4d   : > { %202 = sbr.rel (%p1295_p0) target bundleno = 584 (0x248), region = 32  ;;  %s707_s13 = sshll.u32 (!%p1295_p0), %s1167_s12, 4 }
  0x4e   : > { %s205_s14 = scalar_lea.sflag (!%p1295_p0), [#allocation3], %s1167_s12  ;;  %s1171_s20 = scalar_lea.vmem (!%p1295_p0), [#allocation2], %s707_s13 }
  0x54   : > { %969 = dma.done.wait (%p1296_p5), %s205_s14, 256  }
  0x55   : > { %971 = vsyncadd (%p1296_p5), %s205_s14, 4294967040  ;;  %p1297_p10 = scmp.eq.s32.totalorder %s1057_s19, 0 }
  0x57   : > { %973 = dma.done.wait (%p1297_p10), [#allocation6], 4096   ;;  %p1298_p2 = pmov %p1297_p10 }
  0x58   : > { %v1006_v0 = vmov 0.0   ;;  %v247_v1 = vld [vmem:[#allocation5 + $0x8] sm:$0xff]  ;;  %v249_v2 = vld [vmem:[#allocation5 + $0x18] sm:$0xff]  ;;  %v246_v3 = vld [vmem:[#allocation5] sm:$0xff]  ;;  %v280_v51 = vlaneseq  ;;  %s709_s9 = sshll.u32 %s1167_s12, 5  ;;  %s711_s28 = sshll.u32 %s1057_s19, 4 }
  0x59   : > { %975 = vsyncadd (%p1298_p2), [#allocation6], 4294963200  ;;  %354 = vmatprep.mubr.f32.mxu0 %v1006_v0  ;;  %451 = vmatprep.mubr.f32.mxu1 %v1006_v0  ;;  %v729_v4 = vpack.c.bf16 %v249_v2, %v247_v1  ;;  %v248_v5 = vld [vmem:[#allocation5 + $0x10] sm:$0xff]  ;;  %v251_v6 = vld [vmem:[#allocation5 + $0x28] sm:$0xff]  ;;  %v374_v62 = vstv %s711_s28  ;;  %s1191_s29 = scalar_lea.vmem [#allocation7], %s709_s9  ;;  %vm383_vm1 = vcmask 130048  }
  0x5a   : > { %v253_v7 = vld [vmem:[#allocation5 + $0x38] sm:$0xff]  ;;  %v731_v8 = vpack.c.bf16 %v248_v5, %v246_v3  ;;  %v250_v10 = vld [vmem:[#allocation5 + $0x20] sm:$0xff]  ;;  %v252_v11 = vld [vmem:[#allocation5 + $0x30] sm:$0xff]  ;;  %v281_v52 = vshrl.u32 %v280_v51, 7  ;;  %v373_v59 = vand.u32 127, %v280_v51  ;;  %s570_s10 = sshll.u32 %s1191_s29, 4  ;;  %s1200_s10 = int_to_ptr.vmem [resolvable:$true] %s570_s10 }
  0x5b   : > { %v733_v9 = vpack.c.bf16 %v253_v7, %v251_v6  ;;  %v255_v12 = vld [vmem:[#allocation5 + $0x48] sm:$0xff]  ;;  %730 = vmatprep.subr.bf16.mxu0 %v729_v4  ;;  %v257_v13 = vld [vmem:[#allocation5 + $0x58] sm:$0xff]  ;;  %v735_v14 = vpack.c.bf16 %v252_v11, %v250_v10  ;;  %v254_v16 = vld [vmem:[#allocation5 + $0x40] sm:$0xff]  ;;  %s727_s6 = sshll.u32 %s1057_s19, 9  ;;  %s551_s8 = scalar_lea.sflag [#allocation4], %s1167_s12 }
  0x5c   : > { %732 = vmatpush1.bf16.msra.mxu0 %v731_v8  ;;  %v737_v15 = vpack.c.bf16 %v257_v13, %v255_v12  ;;  %v256_v17 = vld [vmem:[#allocation5 + $0x50] sm:$0xff]  ;;  %v259_v18 = vld [vmem:[#allocation5 + $0x68] sm:$0xff]  ;;  %v261_v19 = vld [vmem:[#allocation5 + $0x78] sm:$0xff]  ;;  %v282_v53 = vsub.s32 0, %v281_v52  ;;  %v286_v55 = vsub.s32 1, %v281_v52  ;;  %v375_v2 = vadd.s32 %v374_v62, %v373_v59  ;;  %s1206_s26 = scalar_lea.hbm %s1283_s3, %s727_s6  ;;  %s896_s25 = scalar_lea.vmem %s1200_s10, 512 }
  0x5d   : > { %734 = vmatprep.subr.bf16.mxu0 %v733_v9  ;;  %v739_v20 = vpack.c.bf16 %v256_v17, %v254_v16  ;;  %v741_v21 = vpack.c.bf16 %v261_v19, %v259_v18  ;;  %v258_v22 = vld [vmem:[#allocation5 + $0x60] sm:$0xff]  ;;  %v260_v23 = vld [vmem:[#allocation5 + $0x70] sm:$0xff]  ;;  %v263_v24 = vld [vmem:[#allocation5 + $0x88] sm:$0xff]  ;;  %p897_p1 = scmp.ne.s32.totalorder %s1200_s10, %s896_s25  ;;  %s1007_s11 = smov [#allocation7]  }
  0x5e   : > { %v265_v25 = vld [vmem:[#allocation5 + $0x98] sm:$0xff]  ;;  %v743_v26 = vpack.c.bf16 %v260_v23, %v258_v22  ;;  %v262_v28 = vld [vmem:[#allocation5 + $0x80] sm:$0xff]  ;;  %v264_v29 = vld [vmem:[#allocation5 + $0x90] sm:$0xff]  ;;  %vm376_vm0 = vcmp.lt.s32.totalorder %v375_v2, 64  ;;  %s900_s13 = sshll.u32 %s1007_s11, 4  ;;  %s901_s13 = int_to_ptr.vmem [resolvable:$false] %s900_s13 }
  0x5f   : > { %v745_v27 = vpack.c.bf16 %v265_v25, %v263_v24  ;;  %v267_v30 = vld [vmem:[#allocation5 + $0xa8] sm:$0xff]  ;;  %v269_v31 = vld [vmem:[#allocation5 + $0xb8] sm:$0xff]  ;;  %v747_v32 = vpack.c.bf16 %v264_v29, %v262_v28  ;;  %v266_v34 = vld [vmem:[#allocation5 + $0xa0] sm:$0xff]  ;;  %p898_p4 = pnand %p897_p1, %p1119_p12  ;;  %s902_s14 = scalar_lea.vmem %s901_s13, 1024 }
  0x60   : > { %736 = vmatpush1.bf16.msra.mxu0 %v735_v14  ;;  %v749_v33 = vpack.c.bf16 %v269_v31, %v267_v30  ;;  %v268_v35 = vld [vmem:[#allocation5 + $0xb0] sm:$0xff]  ;;  %v271_v36 = vld [vmem:[#allocation5 + $0xc8] sm:$0xff]  ;;  %v273_v37 = vld [vmem:[#allocation5 + $0xd8] sm:$0xff]  ;;  %v712_v14 = vsel %vm376_vm0, 1.0, %v1006_v0  ;;  %p903_p8 = scmp.lt.s32.totalorder %s1200_s10, %s901_s13  ;;  %p904_p13 = scmp.lt.s32.totalorder %s902_s14, %s896_s25 }
  0x61   : > { %738 = vmatprep.subr.bf16.mxu0 %v737_v15  ;;  %v751_v38 = vpack.c.bf16 %v268_v35, %v266_v34  ;;  %v753_v39 = vpack.c.bf16 %v273_v37, %v271_v36  ;;  %v270_v40 = vld [vmem:[#allocation5 + $0xc0] sm:$0xff]  ;;  %v272_v41 = vld [vmem:[#allocation5 + $0xd0] sm:$0xff]  ;;  %v275_v42 = vld [vmem:[#allocation5 + $0xe8] sm:$0xff]  ;;  %p899_p6 = pneg %p898_p4 }
  0x62   : > { %v277_v43 = vld [vmem:[#allocation5 + $0xf8] sm:$0xff]  ;;  %v755_v44 = vpack.c.bf16 %v272_v41, %v270_v40  ;;  %v274_v46 = vld [vmem:[#allocation5 + $0xe0] sm:$0xff]  ;;  %v276_v47 = vld [vmem:[#allocation5 + $0xf0] sm:$0xff]  ;;  %p905_p3 = por %p904_p13, %p903_p8 }
  0x63   : > { %v757_v45 = vpack.c.bf16 %v277_v43, %v275_v42  ;;  %v759_v48 = vpack.c.bf16 %v276_v47, %v274_v46  ;;  %v244_v49 = vld [vmem:[%s1171_s20] sm:$0xff]  ;;  %v245_v50 = vld [vmem:[%s1171_s20 + $0x8] sm:$0xff] }
  0x64   : > { %740 = vmatpush1.bf16.msra.mxu0 %v739_v20  ;;  %v278_v54 = vld [vmem:[%s1282_s2] sm:$0x3]  ;;  %p906_p7 = pnand %p905_p3, %p899_p6 }
  0x65   : > { %742 = vmatprep.subr.bf16.mxu0 %v741_v21  ;;  %v283_v56 = vrot.slane %v278_v54, %v282_v53  ;;  %v287_v57 = vrot.slane %v278_v54, %v286_v55 }
  0x68   : > { %744 = vmatpush1.bf16.msra.mxu0 %v743_v26 }
  0x69   : > { %746 = vmatprep.subr.bf16.mxu0 %v745_v27 }
  0x6c   : > { %748 = vmatpush1.bf16.msra.mxu0 %v747_v32 }
  0x6d   : > { %750 = vmatprep.subr.bf16.mxu0 %v749_v33 }
  0x70   : > { %752 = vmatpush1.bf16.msra.mxu0 %v751_v38 }
  0x71   : > { %754 = vmatprep.subr.bf16.mxu0 %v753_v39 }
  0x74   : > { %756 = vmatpush1.bf16.msra.mxu0 %v755_v44 }
  0x75   : > { %758 = vmatprep.subr.bf16.mxu0 %v757_v45 }
  0x78   : > { %760 = vmatpush1.bf16.msra.mxu0 %v759_v48 }
  0x7b   : > { %355 = vmatmul.mubr.f32.vlgmr.msra.gmra.mrb[0].mxu0 %v244_v49 }
  0x7c   : > { %360 = vmatprep.mubr.f32.mxu0 %v1006_v0 }
  0x7f   : > { %361 = vmatmul.mubr.f32.gmra.mrb[2].mxu0 %v245_v50 }
 0x14e   : > { %v356_v58 = vpop.f32.mrb[0].mxu0 }
 0x14f   : > { %v357_v60 = vadd.f32 %v356_v58, %v283_v56  ;;  %v358_v61 = vpop.f32.mrb[1].mxu0 }
 0x150   : > { %v359_v63 = vadd.f32 %v358_v61, %v287_v57 }
 0x151   : > { %367 = vst [vmem:[%s1191_s29] sm:$0xff] %v357_v60  ;;  %v379_v6 = vmul.f32 %v357_v60, %v357_v60 }
 0x152   : > { %368 = vst [vmem:[%s1191_s29 + $0x8] sm:$0xff] %v359_v63  ;;  %v362_v1 = vpop.f32.mrb[2].mxu0  ;;  %v380_v9 = vmul.f32 %v359_v63, %v359_v63 }
 0x153   : > { %v363_v3 = vadd.f32 %v362_v1, %v283_v56  ;;  %v364_v4 = vpop.f32.mrb[3].mxu0 }
 0x154   : > { %v365_v5 = vadd.f32 %v364_v4, %v287_v57 }
 0x155   : > { %369 = vst [vmem:[%s1191_s29 + $0x10] sm:$0xff] %v363_v3  ;;  %v381_v7 = vmul.f32 %v363_v3, %v363_v3  ;;  %v763_v8 = vpack.c.bf16 %v363_v3, %v357_v60 }
 0x156   : > { %370 = vst [vmem:[%s1191_s29 + $0x18] sm:$0xff] %v365_v5  ;;  %v382_v10 = vmul.f32 %v365_v5, %v365_v5  ;;  %v761_v11 = vpack.c.bf16 %v365_v5, %v359_v63 }
 0x157   : > { %v767_v12 = vpack.c.bf16 %v381_v7, %v379_v6 }
 0x158   : > { %762 = vmatprep.subr.bf16.mxu1 %v761_v11  ;;  %v765_v13 = vpack.c.bf16 %v382_v10, %v380_v9 }
 0x159   : > { %764 = vmatpush1.bf16.msra.mxu1 %v763_v8 }
 0x15a   : > { %766 = vmatprep.subr.bf16.mxu1 %v765_v13 }
 0x15c   : > { %713 = vmatmul.mubr.msk.f32.vlgmr.msra.gmra.mrb[0].mxu1 %vm383_vm1, %v712_v14 }
 0x15d   : > { %768 = vmatpush1.bf16.msra.mxu1 %v767_v12  ;;  %522 = vmatprep.mubr.f32.mxu1 %v1006_v0 }
 0x160   : > { %714 = vmatmul.mubr.msk.f32.vlgmr.msra.gmra.mrb[2].mxu1 %vm383_vm1, %v712_v14 }
 0x161   : > { %909 = shalt.err (!%p906_p7)
}
 0x162   : > { %s910_s20 = scalar_lea.hbm %s1206_s26, 512  ;;  %s914_s9 = scalar_lea.hbm %s1283_s3, 2048 }
 0x163   : > { %p911_p9 = scmp.ne.s32.totalorder %s1206_s26, %s910_s20  ;;  %p915_p5 = scmp.lt.u32.totalorder %s1206_s26, %s1283_s3 }
 0x164   : > { %p916_p10 = scmp.lt.u32.totalorder %s914_s9, %s910_s20  ;;  %p918_p1 = scmp.lt.u32.totalorder %s910_s20, %s1206_s26 }
 0x165   : > { %p912_p11 = pnand %p911_p9, %p1119_p12 }
 0x166   : > { %p917_p2 = por %p916_p10, %p915_p5 }
 0x167   : > { %p913_p0 = pneg %p912_p11 }
 0x168   : > { %p919_p4 = por %p918_p1, %p917_p2 }
 0x16a   : > { %p920_p6 = pnand %p919_p4, %p913_p0 }
 0x16c   : > { %923 = shalt.err (!%p920_p6)
}
 0x16d   : > { %s1008_s6 = smov 256   ;;  %s1009_s5 = smov 16   ;;  %vm535_vm2 = vcmask 1040384  }
 0x16e   : > { %775 = dma.vmem_to_hbm [thread:$0]  (%p1119_p12), %s1200_s10, 512, %s1206_s26, %s551_s8, %s1008_s6, %s1008_s6, %s1009_s5  }
 0x16f   : > { %s710_s7 = sshll.u32 %s1167_s12, 2  ;;  %s728_s25 = sshll.u32 %s1057_s19, 6 }
 0x170   : > { %s241_s11 = scalar_lea.vmem [#allocation8], %s710_s7  ;;  %s1237_s10 = scalar_lea.hbm %s1284_s4, %s728_s25 }
 0x171   : > { %s587_s13 = sshll.u32 %s241_s11, 4  ;;  %s556_s26 = scalar_lea.sflag [#allocation9], %s1167_s12  ;;  %s1239_s13 = int_to_ptr.vmem [resolvable:$true] %s587_s13 }
 0x172   : > { %s924_s8 = scalar_lea.vmem %s1239_s13, 64  ;;  %s1010_s19 = smov [#allocation8]  }
 0x173   : > { %p925_p8 = scmp.ne.s32.totalorder %s1239_s13, %s924_s8  ;;  %s928_s21 = sshll.u32 %s1010_s19, 4  ;;  %s929_s21 = int_to_ptr.vmem [resolvable:$false] %s928_s21 }
 0x174   : > { %s930_s23 = scalar_lea.vmem %s929_s21, 128  ;;  %p931_p7 = scmp.lt.s32.totalorder %s1239_s13, %s929_s21 }
 0x175   : > { %p926_p13 = pnand %p925_p8, %p1119_p12  ;;  %p932_p9 = scmp.lt.s32.totalorder %s930_s23, %s924_s8 }
 0x177   : > { %p927_p3 = pneg %p926_p13  ;;  %p933_p11 = por %p932_p9, %p931_p7 }
 0x179   : > { %p934_p0 = pnand %p933_p11, %p927_p3 }
 0x22f   : > { %v453_v0 = vpop.f32.mrb[0].mxu1 }
 0x230   : > { %v455_v15 = vpop.f32.mrb[1].mxu1 }
 0x233   : > { %v524_v16 = vpop.f32.mrb[2].mxu1 }
 0x234   : > { %v531_v17 = vrot.slane %v524_v16, 7  ;;  %v526_v18 = vpop.f32.mrb[3].mxu1 }
 0x235   : > { %v532_v19 = vrot.slane %v526_v18, 7 }
 0x236   : > { %v536_v20 = vsel %vm535_vm2, %v453_v0, %v531_v17 }
 0x237   : > { %v537_v21 = vsel %vm535_vm2, %v455_v15, %v532_v19 }
 0x238   : > { %v540_v22 = vcombine.low %v536_v20, %v537_v21 }
 0x23a   : > { %715 = vst.sshfl [vmem:[%s241_s11] sm:$0x33 pattern:$0x76325410] %v540_v22 }
 0x23b   : > { %937 = shalt.err (!%p934_p0)
}
 0x23c   : > { %s938_s12 = scalar_lea.hbm %s1237_s10, 64  ;;  %s942_s29 = scalar_lea.hbm %s1284_s4, 256 }
 0x23d   : > { %p939_p5 = scmp.ne.s32.totalorder %s1237_s10, %s938_s12  ;;  %p943_p1 = scmp.lt.u32.totalorder %s1237_s10, %s1284_s4 }
 0x23e   : > { %p944_p4 = scmp.lt.u32.totalorder %s942_s29, %s938_s12  ;;  %p946_p8 = scmp.lt.u32.totalorder %s938_s12, %s1237_s10 }
 0x23f   : > { %p940_p10 = pnand %p939_p5, %p1119_p12 }
 0x240   : > { %p945_p6 = por %p944_p4, %p943_p1 }
 0x241   : > { %p941_p2 = pneg %p940_p10 }
 0x242   : > { %p947_p13 = por %p946_p8, %p945_p6 }
 0x244   : > { %p948_p3 = pnand %p947_p13, %p941_p2 }
 0x246   : > { %951 = shalt.err (!%p948_p3)
}
 0x247   : > { %776 = dma.vmem_to_hbm [thread:$0]  (%p1119_p12), %s1239_s13, 64, %s1237_s10, %s556_s26  }
 0x248 PF: > { %p797_p7 = scmp.ge.s32.totalorder %s998_s18, 2  ;;  %s599_s7 = sand.u32 1, %s986_s15  }
 0x249   : > { %p1299_p9 = scmp.ne.s32.totalorder %s1289_s22, 0  ;;  %s600_s25 = scalar_lea.sflag [#allocation4], %s599_s7 }
 0x24b   : > { %p788_p11 = pnand %p797_p7, %p1299_p9 }
 0x24d   : > { %977 = dma.done.wait (!%p788_p11), %s600_s25, 512  }
 0x24e   : > { %979 = vsyncadd (!%p788_p11), %s600_s25, 4294966784  ;;  %s609_s11 = scalar_lea.sflag [#allocation9], %s599_s7 }
 0x24f   : > { %981 = dma.done.wait (!%p788_p11), %s609_s11, 64  }
 0x250   : > { %983 = vsyncadd (!%p788_p11), %s609_s11, 4294967232  ;;  %p22_p12 = scmp.ge.s32.totalorder %s1089_s27, 6   ;;  %s1300_s15 = smov %s990_s16 }
 0x251   : > { %s1301_s16 = smov %s994_s17  ;;  %s1302_s17 = smov %s1115_s24 }
 0x252   : > { %s1303_s18 = smov %s1089_s27  ;;  %24 = sbr.rel (!%p22_p12) target bundleno = 8 (0x8), region = 98 }
 0x259   :  { %614 = vsyncpa [#allocation3], 1 }
 0x25a   :  { %616 = vsyncpa [#allocation3 + $0x1], 1 }
 0x25b   :  { %617 = vsyncpa [#allocation6], 1 }
 0x25c   :  { %618 = vsyncpa [#allocation4], 1 }
 0x25d   :  { %620 = vsyncpa [#allocation4 + $0x1], 1 }
 0x25e   :  { %621 = vsyncpa [#allocation9], 1 }
 0x25f   :  { %623 = vsyncpa [#allocation9 + $0x1], 1 }

</bundles_post_ra>
